<compile_context>
chip_gen: v6e
topology: v6e:2x2x1
jax: 0.10.0
libtpu: 0.0.40
codegen_flags: <defaults>
</compile_context>

<pallas_src>
import functools

import jax
import jax.numpy as jnp
from jax.experimental import pallas as pl
from jax.experimental.pallas import tpu as pltpu


def _tsm_kernel(x_ref, o_ref, *, fold):
    # Block shape: (1, T, C, HW_TILE). fold is a Python int -> static slices.
    T = x_ref.shape[1]
    c = x_ref.shape[2]
    hw = x_ref.shape[3]

    if fold == 0:
        # Degenerate case (c < fold_div): pure pass-through.
        o_ref[...] = x_ref[...]
        return

    # Pass-through channels [2*fold, c).
    if c > 2 * fold:
        o_ref[0, :, 2 * fold:, :] = x_ref[0, :, 2 * fold:, :]

    zeros = jnp.zeros((fold, hw), x_ref.dtype)

    # Backward-in-time shift for channels [0, fold): out[t] = x[t+1].
    if T > 1:
        o_ref[0, :T - 1, :fold, :] = x_ref[0, 1:, :fold, :]
    o_ref[0, T - 1, :fold, :] = zeros

    # Forward-in-time shift for channels [fold, 2*fold): out[t] = x[t-1].
    if T > 1:
        o_ref[0, 1:, fold:2 * fold, :] = x_ref[0, :T - 1, fold:2 * fold, :]
    o_ref[0, 0, fold:2 * fold, :] = zeros


def _pick_hw_tile(n_frame, c, hw, dtype_bytes, budget_bytes=4 * 1024 * 1024):
    """Largest lane-dense tile (multiple of 128, divides hw) within budget."""
    if hw % 128 != 0:
        # Not lane-tileable -> use the full extent (allowed by BlockSpec).
        return hw
    per_lane_bytes = n_frame * c * dtype_bytes
    max_lanes = max(128, budget_bytes // max(per_lane_bytes, 1))
    best = 128
    t = 128
    while t <= hw:
        if hw % t == 0 and t <= max_lanes:
            best = t
        t += 128
    return best


def tsm(x, n_frame, fold_div=3):
    """Pallas TSM forward. x: (b, c, h, w) with b % n_frame == 0."""
    b, c, h, w = x.shape
    assert b % n_frame == 0
    n_clips = b // n_frame
    fold = c // fold_div
    last_fold = c - (fold_div - 1) * fold
    # torch.split([fold, fold, last_fold]) must cover exactly c channels;
    # this only holds for fold_div == 3 (or fold == 0).
    assert 2 * fold + last_fold == c, (
        "TSM reference semantics require fold_div == 3 (split sizes must sum to c)")
    hw = h * w

    dtype_bytes = jnp.dtype(x.dtype).itemsize
    hw_tile = _pick_hw_tile(n_frame, c, hw, dtype_bytes)
    block_bytes = n_frame * c * hw_tile * dtype_bytes
    # in + out, double-buffered (4 blocks), plus headroom; clamp to a limit
    # that is safe on v5e/v6e (128 MiB physical) and v7x (64 MiB physical).
    vmem_limit = int(min(48 * 1024 * 1024, max(16 * 1024 * 1024, 8 * block_bytes)))

    xr = x.reshape(n_clips, n_frame, c, hw)

    kernel = functools.partial(_tsm_kernel, fold=fold)
    out = pl.pallas_call(
        kernel,
        out_shape=jax.ShapeDtypeStruct((n_clips, n_frame, c, hw), x.dtype),
        grid=(n_clips, pl.cdiv(hw, hw_tile)),
        in_specs=[pl.BlockSpec((1, n_frame, c, hw_tile),
                               lambda i, j: (i, 0, 0, j))],
        out_specs=pl.BlockSpec((1, n_frame, c, hw_tile),
                               lambda i, j: (i, 0, 0, j)),
        compiler_params=pltpu.CompilerParams(
            dimension_semantics=("parallel", "parallel"),
            vmem_limit_bytes=vmem_limit,
        ),
    )(xr)
    return out.reshape(b, c, h, w)


def tsm_ref(x, n_frame, fold_div=3):
    """Pure-JAX reference matching the PyTorch module exactly."""
    b, c, h, w = x.shape
    xr = x.reshape(-1, n_frame, c, h, w)
    fold = c // fold_div
    last_fold = c - (fold_div - 1) * fold
    out1 = xr[:, :, :fold]
    out2 = xr[:, :, fold:2 * fold]
    out3 = xr[:, :, 2 * fold:2 * fold + last_fold]
    pad1 = jnp.zeros_like(out1[:, -1:])
    out1 = jnp.concatenate([out1[:, 1:], pad1], axis=1)
    pad2 = jnp.zeros_like(out2[:, :1])
    out2 = jnp.concatenate([pad2, out2[:, :-1]], axis=1)
    out = jnp.concatenate([out1, out2, out3], axis=2)
    return out.reshape(-1, c, h, w)


if __name__ == "__main__":
    # Small deterministic example consistent with the module:
    # n_frame=4, 2 clips -> batch=8, channels=4 (fold_div=3 -> fold=1, last=2),
    # spatial 16x16 (hw=256, lane-dense).
    n_frame = 4
    b, c, h, w = 2 * n_frame, 4, 16, 16

    key = jax.random.PRNGKey(0)
    x = jax.random.normal(key, (b, c, h, w), dtype=jnp.float32)

    out = tsm(x, n_frame=n_frame, fold_div=3)
    out = jax.block_until_ready(out)

    ref = tsm_ref(x, n_frame=n_frame, fold_div=3)
    assert out.shape == (b, c, h, w)
    assert jnp.allclose(out, ref, atol=0.0, rtol=0.0), "mismatch vs reference"

    print("KERNEL_OK")
</pallas_src>

<mosaic_0001>
module attributes {stable_mosaic.version = 11 : i64} {
  func.func @_tsm_kernel(%arg0: i32, %arg1: i32, %arg2: memref<1x4x4x256xf32, #tpu.memory_space<vmem>>, %arg3: memref<1x4x4x256xf32, #tpu.memory_space<vmem>>) attributes {dimension_semantics = [#tpu.dimension_semantics<parallel>, #tpu.dimension_semantics<parallel>], iteration_bounds = array<i64: 2, 1>, scalar_prefetch = 0 : i64, scratch_operands = 0 : i64, tpu.core_type = #tpu.core_type<tc>, window_params = [{transform_indices = @transform_0, window_bounds = array<i64: 1, 4, 4, 256>}, {transform_indices = @transform_1, window_bounds = array<i64: 1, 4, 4, 256>}]} {
    %c0 = arith.constant 0 : index
    %c0_0 = arith.constant 0 : index
    %c2 = arith.constant 2 : index
    %c0_1 = arith.constant 0 : index
    %0 = vector.load %arg2[%c0, %c0_0, %c2, %c0_1] : memref<1x4x4x256xf32, #tpu.memory_space<vmem>>, vector<1x4x2x256xf32>
    %1 = vector.shape_cast %0 : vector<1x4x2x256xf32> to vector<4x2x256xf32>
    %c0_2 = arith.constant 0 : index
    %c0_3 = arith.constant 0 : index
    %c2_4 = arith.constant 2 : index
    %c0_5 = arith.constant 0 : index
    %2 = vector.load %arg3[%c0_2, %c0_3, %c2_4, %c0_5] : memref<1x4x4x256xf32, #tpu.memory_space<vmem>>, vector<1x4x2x256xf32>
    %3 = vector.shape_cast %2 : vector<1x4x2x256xf32> to vector<4x2x256xf32>
    %4 = vector.shape_cast %1 : vector<4x2x256xf32> to vector<1x4x2x256xf32>
    tpu.vector_store %arg3[%c0_2, %c0_3, %c2_4, %c0_5], %4 {strides = array<i32>} : memref<1x4x4x256xf32, #tpu.memory_space<vmem>>, vector<1x4x2x256xf32>,
    %cst = arith.constant 0.000000e+00 : f32
    %5 = vector.broadcast %cst : f32 to vector<1x256xf32>
    %c0_6 = arith.constant 0 : index
    %c1 = arith.constant 1 : index
    %c0_7 = arith.constant 0 : index
    %c0_8 = arith.constant 0 : index
    %6 = vector.load %arg2[%c0_6, %c1, %c0_7, %c0_8] : memref<1x4x4x256xf32, #tpu.memory_space<vmem>>, vector<1x3x1x256xf32>
    %7 = vector.shape_cast %6 : vector<1x3x1x256xf32> to vector<3x1x256xf32>
    %c0_9 = arith.constant 0 : index
    %c0_10 = arith.constant 0 : index
    %c0_11 = arith.constant 0 : index
    %c0_12 = arith.constant 0 : index
    %8 = vector.load %arg3[%c0_9, %c0_10, %c0_11, %c0_12] : memref<1x4x4x256xf32, #tpu.memory_space<vmem>>, vector<1x3x1x256xf32>
    %9 = vector.shape_cast %8 : vector<1x3x1x256xf32> to vector<3x1x256xf32>
    %10 = vector.shape_cast %7 : vector<3x1x256xf32> to vector<1x3x1x256xf32>
    tpu.vector_store %arg3[%c0_9, %c0_10, %c0_11, %c0_12], %10 {strides = array<i32>} : memref<1x4x4x256xf32, #tpu.memory_space<vmem>>, vector<1x3x1x256xf32>,
    %c0_13 = arith.constant 0 : index
    %c3 = arith.constant 3 : index
    %c0_14 = arith.constant 0 : index
    %c0_15 = arith.constant 0 : index
    %11 = vector.load %arg3[%c0_13, %c3, %c0_14, %c0_15] : memref<1x4x4x256xf32, #tpu.memory_space<vmem>>, vector<1x1x1x256xf32>
    %12 = vector.shape_cast %11 : vector<1x1x1x256xf32> to vector<1x256xf32>
    %13 = vector.shape_cast %5 : vector<1x256xf32> to vector<1x1x1x256xf32>
    tpu.vector_store %arg3[%c0_13, %c3, %c0_14, %c0_15], %13 {strides = array<i32>} : memref<1x4x4x256xf32, #tpu.memory_space<vmem>>, vector<1x1x1x256xf32>,
    %c0_16 = arith.constant 0 : index
    %c0_17 = arith.constant 0 : index
    %c1_18 = arith.constant 1 : index
    %c0_19 = arith.constant 0 : index
    %14 = vector.load %arg2[%c0_16, %c0_17, %c1_18, %c0_19] : memref<1x4x4x256xf32, #tpu.memory_space<vmem>>, vector<1x3x1x256xf32>
    %15 = vector.shape_cast %14 : vector<1x3x1x256xf32> to vector<3x1x256xf32>
    %c0_20 = arith.constant 0 : index
    %c1_21 = arith.constant 1 : index
    %c1_22 = arith.constant 1 : index
    %c0_23 = arith.constant 0 : index
    %16 = vector.load %arg3[%c0_20, %c1_21, %c1_22, %c0_23] : memref<1x4x4x256xf32, #tpu.memory_space<vmem>>, vector<1x3x1x256xf32>
    %17 = vector.shape_cast %16 : vector<1x3x1x256xf32> to vector<3x1x256xf32>
    %18 = vector.shape_cast %15 : vector<3x1x256xf32> to vector<1x3x1x256xf32>
    tpu.vector_store %arg3[%c0_20, %c1_21, %c1_22, %c0_23], %18 {strides = array<i32>} : memref<1x4x4x256xf32, #tpu.memory_space<vmem>>, vector<1x3x1x256xf32>,
    %c0_24 = arith.constant 0 : index
    %c0_25 = arith.constant 0 : index
    %c1_26 = arith.constant 1 : index
    %c0_27 = arith.constant 0 : index
    %19 = vector.load %arg3[%c0_24, %c0_25, %c1_26, %c0_27] : memref<1x4x4x256xf32, #tpu.memory_space<vmem>>, vector<1x1x1x256xf32>
    %20 = vector.shape_cast %19 : vector<1x1x1x256xf32> to vector<1x256xf32>
    %21 = vector.shape_cast %5 : vector<1x256xf32> to vector<1x1x1x256xf32>
    tpu.vector_store %arg3[%c0_24, %c0_25, %c1_26, %c0_27], %21 {strides = array<i32>} : memref<1x4x4x256xf32, #tpu.memory_space<vmem>>, vector<1x1x1x256xf32>,
    return
  }
  func.func @transform_0(%arg0: i32, %arg1: i32) -> (i32, i32, i32, i32) {
    %c0_i32 = arith.constant 0 : i32
    %c0_i32_0 = arith.constant 0 : i32
    %c0_i32_1 = arith.constant 0 : i32
    return %arg0, %c0_i32, %c0_i32_0, %arg1 : i32, i32, i32, i32
  }
  func.func @transform_1(%arg0: i32, %arg1: i32) -> (i32, i32, i32, i32) {
    %c0_i32 = arith.constant 0 : i32
    %c0_i32_0 = arith.constant 0 : i32
    %c0_i32_1 = arith.constant 0 : i32
    return %arg0, %c0_i32, %c0_i32_0, %arg1 : i32, i32, i32, i32
  }
}

</mosaic_0001>

<bundles_post_ra>
// kernel: tpu_custom_call.1
= control target key start
LH: loop header
LB: loop body
LE: loop exit
PB: predicated region body
PF: predicated region fallthrough
CT: control target
= control target key end

     0   :  { %6 = vsyncpa [#allocation3], 0  ;;  %s705_s0 = inlined_call_operand.hbm [shape: f32[2,4,4,256], index: 0, kind: input, shape index: {}]   ;;  %s706_s1 = inlined_call_operand.hbm [shape: f32[2,4,4,256], index: 1, kind: output, shape index: {}]  }
   0x1   :  { %8 = vsyncpa [#allocation3 + $0x1], 0 }
   0x2   :  { %9 = vsyncpa [#allocation4], 0 }
   0x3   :  { %11 = vsyncpa [#allocation4 + $0x1], 0  ;;  %s527_s6 = smov 0   ;;  %s529_s7 = smov 0  }
   0x4   :  { %s531_s8 = smov 0   ;;  %s533_s9 = smov 0  }
   0x5   :  { %s535_s10 = smov 0   ;;  %s537_s11 = smov 0  }
   0x6 LB: > { %s303_s12 = sadd.s32 4294967295, %s508_s11   ;;  %s304_s13 = sadd.s32 4294967294, %s508_s11   ;;  %s508_s11 = sphi %s537_s11, %s17_s11   ;;  %s504_s10 = sphi %s535_s10, %s719_s10   ;;  %s500_s9 = sphi %s533_s9, %s718_s9   ;;  %s496_s8 = sphi %s531_s8, %s717_s8   ;;  %s492_s7 = sphi %s529_s7, %s716_s7   ;;  %s488_s6 = sphi %s527_s6, %s715_s6  }
   0x7   : > { %s29_s14 = sadd.s32 1, %s504_s10  ;;  %s38_s15 = sadd.s32 1, %s496_s8 }
   0x8   : > { %p31_p0 = scmp.ge.s32.totalorder %s29_s14, 2  ;;  %p45_p1 = scmp.ne.s32.totalorder %s496_s8, %s492_s7 }
   0x9   : > { %p46_p2 = scmp.eq.s32.totalorder %s508_s11, 0  ;;  %p51_p3 = scmp.ne.s32.totalorder %s492_s7, %s488_s6 }
   0xa   : > { %s721_s14 = smov (%p31_p0, %s29_s14), 0  ;;  %p52_p5 = scmp.eq.s32.totalorder %s303_s12, 0 }
   0xb   : > { %p568_p4 = por %p46_p2, %p45_p1  ;;  %s33_s17 = ssub.s32 %s504_s10, %s721_s14 }
   0xc   : > { %p77_p6 = scmp.eq.s32.totalorder %s303_s12, 1  ;;  %p36_p7 = scmp.eq.s32.totalorder %s33_s17, 0 }
   0xd   : > { %p574_p8 = por %p52_p5, %p51_p3  ;;  %p83_p10 = scmp.eq.s32.totalorder %s304_s13, 1 }
   0xe   : > { %p578_p9 = por %p77_p6, %p45_p1  ;;  %p345_p13 = scmp.lt.s32.totalorder %s508_s11, 2 }
   0xf   : > { %s583_s20 = scalar_select %p36_p7, %s496_s8, %s38_s15  }
  0x10   : > { %p585_p11 = por %p83_p10, %p51_p3  ;;  %s103_s22 = sand.u32 1, %s496_s8  }
  0x11   : > { %s307_s23 = sshll.u32 %s103_s22, 5  ;;  %s331_s24 = sshll.u32 %s504_s10, 9 }
  0x12   : > { %s115_s27 = scalar_lea.hbm %s705_s0, %s331_s24  ;;  %s107_s28 = scalar_lea.vmem [#allocation2], %s307_s23 }
  0x13   : > { %s116_s29 = sshll.u32 %s107_s28, 4  ;;  %p598_p0 = pnand %p345_p13, %p568_p4  ;;  %s117_s29 = int_to_ptr.vmem [resolvable:$true] %s116_s29 }
  0x14   : > { %p310_p1 = scmp.ge.s32.totalorder %s508_s11, 1  ;;  %s104_s2 = scalar_lea.sflag [#allocation3], %s103_s22 }
  0x15   : > { %p402_p2 = pneg %p598_p0  ;;  %s413_s3 = scalar_lea.vmem %s117_s29, 512 }
  0x16   : > { %p414_p3 = scmp.ne.s32.totalorder %s117_s29, %s413_s3  ;;  %s510_s4 = smov [#allocation2]  }
  0x17   : > { %s418_s5 = sshll.u32 %s510_s4, 4  ;;  %s419_s5 = int_to_ptr.vmem [resolvable:$false] %s418_s5 }
  0x18   : > { %p416_p5 = pnand %p414_p3, %p402_p2  ;;  %s420_s12 = scalar_lea.vmem %s419_s5, 1024 }
  0x19   : > { %p421_p7 = scmp.lt.s32.totalorder %s117_s29, %s419_s5  ;;  %p422_p10 = scmp.lt.s32.totalorder %s420_s12, %s413_s3 }
  0x1a   : > { %p417_p6 = pneg %p416_p5 }
  0x1b   : > { %p423_p12 = por %p422_p10, %p421_p7 }
  0x1d   : > { %p424_p4 = pnand %p423_p12, %p417_p6 }
  0x1f   : > { %427 = shalt.err (!%p424_p4)
}
  0x20   : > { %s511_s13 = smov 128   ;;  %s512_s15 = smov 8  }
  0x21   : > { %340 = dma.hbm_to_vmem [thread:$0]  (!%p598_p0), %s115_s27, 512, %s117_s29, %s104_s2, %s511_s13, %s511_s13, %s512_s15  }
  0x22   : > { %p124_p13 = scmp.lt.s32.totalorder %s508_s11, 3 }
  0x24   : > { %p125_p2 = pnand %p310_p1, %p124_p13 }
  0x25   : > { %s611_s16 = sand.u32 (!%p125_p2), 1, %s492_s7  }
  0x26   : > { %128 = sbr.rel (%p125_p2) target bundleno = 75 (0x4b), region = 24  ;;  %s311_s17 = sshll.u32 (!%p125_p2), %s611_s16, 5 }
  0x27   : > { %s131_s22 = scalar_lea.sflag (!%p125_p2), [#allocation3], %s611_s16  ;;  %s615_s23 = scalar_lea.vmem (!%p125_p2), [#allocation2], %s311_s17 }
  0x2b   : > { %479 = dma.done.wait (%p574_p8), %s131_s22, 512  }
  0x2c   : > { %481 = vsyncadd (%p574_p8), %s131_s22, 4294966784  ;;  %v169_v0 = vlaneseq  ;;  %s152_s24 = scalar_lea.vmem [#allocation5], %s311_s17  ;;  %v513_v2 = vmov 0.0   ;;  %s332_s18 = sshll.u32 %s500_s9, 9  ;;  %v155_v3 = vld [vmem:[%s615_s23] sm:$0xcc] }
  0x2d   : > { %s211_s25 = sshll.u32 %s152_s24, 4  ;;  %v156_v4 = vld [vmem:[%s615_s23 + $0x8] sm:$0xcc]  ;;  %v157_v5 = vld [vmem:[%s615_s23 + $0x10] sm:$0xcc]  ;;  %159 = vst [vmem:[%s152_s24] sm:$0xcc] %v155_v3  ;;  %s648_s27 = scalar_lea.hbm %s706_s1, %s332_s18  ;;  %s650_s25 = int_to_ptr.vmem [resolvable:$true] %s211_s25 }
  0x2e   : > { %vm621_vm0 = vcmp.lt.s32.totalorder %v169_v0, 256  ;;  %160 = vst [vmem:[%s152_s24 + $0x8] sm:$0xcc] %v156_v4  ;;  %161 = vst [vmem:[%s152_s24 + $0x10] sm:$0xcc] %v157_v5  ;;  %s196_s28 = scalar_lea.sflag [#allocation4], %s611_s16 }
  0x2f   : > { %318 = vst.msk [vmem:[%s152_s24 + $0x18] ss:$4 sm:$0x3] %vm621_vm0, %v513_v2  ;;  %325 = vst.msk [vmem:[%s152_s24 + $0x1] ss:$4 sm:$0x3] %vm621_vm0, %v513_v2 }
  0x30   : > { %v158_v6 = vld [vmem:[%s615_s23 + $0x18] sm:$0xcc]  ;;  %v313_v7 = vld [vmem:[%s615_s23 + $0x8] ss:$4 sm:$0x3]  ;;  %s428_s29 = scalar_lea.vmem %s650_s25, 512 }
  0x31   : > { %162 = vst [vmem:[%s152_s24 + $0x18] sm:$0xcc] %v158_v6  ;;  %173 = vst.msk [vmem:[%s152_s24] ss:$4 sm:$0x3] %vm621_vm0, %v313_v7  ;;  %p429_p8 = scmp.ne.s32.totalorder %s650_s25, %s428_s29  ;;  %s514_s30 = smov [#allocation5]  }
  0x32   : > { %v314_v8 = vld [vmem:[%s615_s23 + $0x10] ss:$4 sm:$0x3]  ;;  %v315_v9 = vld [vmem:[%s615_s23 + $0x18] ss:$4 sm:$0x3] }
  0x33   : > { %316 = vst.msk [vmem:[%s152_s24 + $0x8] ss:$4 sm:$0x3] %vm621_vm0, %v314_v8  ;;  %317 = vst.msk [vmem:[%s152_s24 + $0x10] ss:$4 sm:$0x3] %vm621_vm0, %v315_v9  ;;  %p430_p12 = pnand %p429_p8, %p578_p9 }
  0x34   : > { %v319_v10 = vld [vmem:[%s615_s23 + $0x1] ss:$4 sm:$0x3]  ;;  %v320_v11 = vld [vmem:[%s615_s23 + $0x9] ss:$4 sm:$0x3] }
  0x35   : > { %322 = vst.msk [vmem:[%s152_s24 + $0x9] ss:$4 sm:$0x3] %vm621_vm0, %v319_v10  ;;  %323 = vst.msk [vmem:[%s152_s24 + $0x11] ss:$4 sm:$0x3] %vm621_vm0, %v320_v11  ;;  %p431_p0 = pneg %p430_p12 }
  0x36   : > { %v321_v12 = vld [vmem:[%s615_s23 + $0x11] ss:$4 sm:$0x3]  ;;  %s432_s2 = sshll.u32 %s514_s30, 4  ;;  %s433_s2 = int_to_ptr.vmem [resolvable:$false] %s432_s2 }
  0x37   : > { %324 = vst.msk [vmem:[%s152_s24 + $0x19] ss:$4 sm:$0x3] %vm621_vm0, %v321_v12  ;;  %s434_s3 = scalar_lea.vmem %s433_s2, 1024  ;;  %p435_p1 = scmp.lt.s32.totalorder %s650_s25, %s433_s2 }
  0x38   : > { %p436_p3 = scmp.lt.s32.totalorder %s434_s3, %s428_s29 }
  0x3a   : > { %p437_p5 = por %p436_p3, %p435_p1 }
  0x3c   : > { %p438_p6 = pnand %p437_p5, %p431_p0 }
  0x3e   : > { %441 = shalt.err (!%p438_p6)
}
  0x3f   : > { %s442_s4 = scalar_lea.hbm %s648_s27, 512  ;;  %s446_s13 = scalar_lea.hbm %s706_s1, 1024 }
  0x40   : > { %p443_p7 = scmp.ne.s32.totalorder %s648_s27, %s442_s4  ;;  %p447_p13 = scmp.lt.s32.totalorder %s648_s27, %s706_s1 }
  0x41   : > { %p448_p2 = scmp.lt.s32.totalorder %s446_s13, %s442_s4 }
  0x42   : > { %p444_p10 = pnand %p443_p7, %p578_p9 }
  0x43   : > { %p449_p8 = por %p448_p2, %p447_p13 }
  0x44   : > { %p445_p4 = pneg %p444_p10 }
  0x46   : > { %p450_p12 = pnand %p449_p8, %p445_p4 }
  0x48   : > { %453 = shalt.err (!%p450_p12)
}
  0x49   : > { %s515_s22 = smov 128   ;;  %s516_s23 = smov 8  }
  0x4a   : > { %335 = dma.vmem_to_hbm [thread:$0]  (%p578_p9), %s650_s25, 512, %s648_s27, %s196_s28, %s515_s22, %s515_s22, %s516_s23  }
  0x4b PF: > { %s226_s24 = sand.u32 1, %s488_s6   ;;  %p714_p0 = scmp.ge.s32.totalorder %s508_s11, 2 }
  0x4c   : > { %s227_s18 = scalar_lea.sflag [#allocation4], %s226_s24 }
  0x4d   : > { %p342_p1 = pnand %p714_p0, %p585_p11 }
  0x4f   : > { %p343_p3 = pneg %p342_p1 }
  0x51   : > { %483 = dma.done.wait (%p343_p3), %s227_s18, 512  }
  0x52   : > { %485 = vsyncadd (%p343_p3), %s227_s18, 4294966784  ;;  %s17_s11 = sadd.s32 1, %s508_s11   ;;  %s715_s6 = smov %s492_s7 }
  0x53   : > { %p14_p5 = scmp.ge.s32.totalorder %s17_s11, 4   ;;  %s716_s7 = smov %s496_s8 }
  0x54   : > { %s717_s8 = smov %s583_s20  ;;  %s718_s9 = smov %s504_s10 }
  0x55   : > { %s719_s10 = smov %s721_s14  ;;  %16 = sbr.rel (!%p14_p5) target bundleno = 6 (0x6), region = 83 }
  0x5a   :  { %232 = vsyncpa [#allocation3], 1 }
  0x5b   :  { %234 = vsyncpa [#allocation3 + $0x1], 1 }
  0x5c   :  { %235 = vsyncpa [#allocation4], 1 }
  0x5d   :  { %237 = vsyncpa [#allocation4 + $0x1], 1 }

</bundles_post_ra>
